<compile_context>
chip_gen: v6e
topology: v6e:2x2x1
jax: 0.10.0
libtpu: 0.0.40
codegen_flags: <defaults>
</compile_context>

<pallas_src>
import functools

import jax
import jax.numpy as jnp
from jax.experimental import pallas as pl
from jax.experimental.pallas import tpu as pltpu


def _conv_lrelu_kernel(x_ref, w_ref, b_ref, o_ref, *, negative_slope):
    # x_ref: (1, K, T)     im2col slab tile, K = KH*KW*Cin, T = HW tile (lanes)
    # w_ref: (Cout, K)     reshaped conv weight
    # b_ref: (Cout, 1)     bias
    # o_ref: (1, Cout, T)  output tile (Cout on sublanes, HW on lanes)
    acc = jnp.dot(w_ref[...], x_ref[0],
                  preferred_element_type=jnp.float32)          # (Cout, T) f32
    y = acc + b_ref[...].astype(jnp.float32)                   # bias broadcast
    y = jnp.where(y > 0, y, negative_slope * y)                # leaky_relu(0.2)
    o_ref[0] = y.astype(o_ref.dtype)


def _pick_hw_tile(hw):
    """Largest multiple-of-128 divisor of hw, capped so there are >= 2 spatial
    grid steps (pipelining / megacore) and <= 2048 lanes (VMEM bound)."""
    if hw % 128 != 0:
        return hw                      # full-extent block is still legal
    cap = min(2048, max(128, hw // 2))
    tile = 128
    t = 256
    while t <= cap:
        if hw % t == 0:
            tile = t
        t += 128
    return tile


def conv_leaky_relu2d(x_nchw, weight, bias, *, stride=1, padding=1, dilation=1,
                      groups=1, negative_slope=0.2):
    """x_nchw: (N, Cin, H, W); weight: (Cout, Cin, KH, KW); bias: (Cout,)."""
    if groups != 1:
        # TODO(synk): grouped convolution not implemented (module default is groups=1).
        raise NotImplementedError("groups != 1 not supported")

    N, Cin, H, W = x_nchw.shape
    Cout, Cin_w, KH, KW = weight.shape
    assert Cin_w == Cin

    Hout = (H + 2 * padding - dilation * (KH - 1) - 1) // stride + 1
    Wout = (W + 2 * padding - dilation * (KW - 1) - 1) // stride + 1
    HW = Hout * Wout
    K = KH * KW * Cin

    # ---- wrapper-side layout plumbing (im2col) — pure data movement --------
    x_pad = jnp.pad(x_nchw, ((0, 0), (0, 0),
                             (padding, padding), (padding, padding)))
    cols = []
    for kh in range(KH):
        for kw in range(KW):
            h0, w0 = kh * dilation, kw * dilation
            tap = x_pad[:, :,
                        h0:h0 + (Hout - 1) * stride + 1:stride,
                        w0:w0 + (Wout - 1) * stride + 1:stride]   # (N,Cin,Hout,Wout)
            cols.append(tap.reshape(N, Cin, HW))
    x_col = jnp.concatenate(cols, axis=1)                         # (N, K, HW)

    # weight[cout, cin, kh, kw] -> w2d[cout, (kh*KW + kw)*Cin + cin]
    w2d = jnp.transpose(weight, (0, 2, 3, 1)).reshape(Cout, K)
    b2d = bias.reshape(Cout, 1)

    tile = _pick_hw_tile(HW)
    grid = (N, HW // tile)

    kernel = functools.partial(_conv_lrelu_kernel,
                               negative_slope=negative_slope)

    out = pl.pallas_call(
        kernel,
        out_shape=jax.ShapeDtypeStruct((N, Cout, HW), x_nchw.dtype),
        grid=grid,
        in_specs=[
            pl.BlockSpec((1, K, tile), lambda n, t: (n, 0, t)),
            pl.BlockSpec((Cout, K), lambda n, t: (0, 0)),
            pl.BlockSpec((Cout, 1), lambda n, t: (0, 0)),
        ],
        out_specs=pl.BlockSpec((1, Cout, tile), lambda n, t: (n, 0, t)),
        compiler_params=pltpu.CompilerParams(
            dimension_semantics=("parallel", "parallel"),
            vmem_limit_bytes=32 * 1024 * 1024,
        ),
    )(x_col, w2d, b2d)

    return out.reshape(N, Cout, Hout, Wout)                      # NCHW, no transpose


if __name__ == "__main__":
    key = jax.random.PRNGKey(0)
    k_x, k_w, k_b = jax.random.split(key, 3)

    N, Cin, H, W = 2, 4, 16, 16
    Cout, KH, KW = 8, 3, 3

    x = jax.random.normal(k_x, (N, Cin, H, W), dtype=jnp.float32)

    # Deterministic Conv2d-style init: U(-k, k), k = 1/sqrt(Cin*KH*KW).
    fan_in = Cin * KH * KW
    bound = 1.0 / jnp.sqrt(jnp.float32(fan_in))
    weight = jax.random.uniform(k_w, (Cout, Cin, KH, KW),
                                minval=-bound, maxval=bound, dtype=jnp.float32)
    bias = jax.random.uniform(k_b, (Cout,),
                              minval=-bound, maxval=bound, dtype=jnp.float32)

    out = conv_leaky_relu2d(x, weight, bias)
    out = jax.block_until_ready(out)

    # Reference: XLA conv + leaky relu.
    ref = jax.lax.conv_general_dilated(
        x, weight, window_strides=(1, 1), padding=((1, 1), (1, 1)),
        dimension_numbers=("NCHW", "OIHW", "NCHW"))
    ref = ref + bias[None, :, None, None]
    ref = jnp.where(ref > 0, ref, 0.2 * ref)

    assert out.shape == (N, Cout, H, W)
    assert jnp.allclose(out, ref, atol=1e-4, rtol=1e-4)

    print("KERNEL_OK")
</pallas_src>

<mosaic_0001>
module attributes {stable_mosaic.version = 11 : i64} {
  func.func @_conv_lrelu_kernel(%arg0: i32, %arg1: i32, %arg2: memref<1x36x128xf32, #tpu.memory_space<vmem>>, %arg3: memref<8x36xf32, #tpu.memory_space<vmem>>, %arg4: memref<8x1xf32, #tpu.memory_space<vmem>>, %arg5: memref<1x8x128xf32, #tpu.memory_space<vmem>>) attributes {dimension_semantics = [#tpu.dimension_semantics<parallel>, #tpu.dimension_semantics<parallel>], iteration_bounds = array<i64: 2, 2>, scalar_prefetch = 0 : i64, scratch_operands = 0 : i64, tpu.core_type = #tpu.core_type<tc>, window_params = [{transform_indices = @transform_0, window_bounds = array<i64: 1, 36, 128>}, {pipeline_mode = #tpu.pipeline_mode<synchronous>, transform_indices = @transform_1, window_bounds = array<i64: 8, 36>}, {pipeline_mode = #tpu.pipeline_mode<synchronous>, transform_indices = @transform_2, window_bounds = array<i64: 8, 1>}, {transform_indices = @transform_3, window_bounds = array<i64: 1, 8, 128>}]} {
    %c0 = arith.constant 0 : index
    %c0_0 = arith.constant 0 : index
    %0 = vector.load %arg3[%c0, %c0_0] : memref<8x36xf32, #tpu.memory_space<vmem>>, vector<8x36xf32>
    %c0_1 = arith.constant 0 : index
    %c0_2 = arith.constant 0 : index
    %c0_3 = arith.constant 0 : index
    %1 = vector.load %arg2[%c0_1, %c0_2, %c0_3] : memref<1x36x128xf32, #tpu.memory_space<vmem>>, vector<1x36x128xf32>
    %2 = vector.shape_cast %1 : vector<1x36x128xf32> to vector<36x128xf32>
    %cst = arith.constant dense<0.000000e+00> : vector<8x128xf32>
    %3 = tpu.matmul %0, %2, %cst {dimension_numbers = #tpu.dot_dimension_numbers<[1], [0], [0], [1], [0, 0, 1, 1], [], []>} : vector<8x36xf32>, vector<36x128xf32>, vector<8x128xf32> -> vector<8x128xf32>
    %c0_4 = arith.constant 0 : index
    %c0_5 = arith.constant 0 : index
    %4 = vector.load %arg4[%c0_4, %c0_5] : memref<8x1xf32, #tpu.memory_space<vmem>>, vector<8x1xf32>
    %5 = vector.broadcast %4 : vector<8x1xf32> to vector<8x128xf32>
    %6 = arith.addf %3, %5 : vector<8x128xf32>
    %cst_6 = arith.constant 0.000000e+00 : f32
    %7 = vector.broadcast %cst_6 : f32 to vector<8x128xf32>
    %8 = arith.cmpf ogt, %6, %7 : vector<8x128xf32>
    %cst_7 = arith.constant 2.000000e-01 : f32
    %9 = vector.broadcast %cst_7 : f32 to vector<8x128xf32>
    %10 = arith.mulf %9, %6 : vector<8x128xf32>
    %11 = arith.select %8, %6, %10 : vector<8x128xi1>, vector<8x128xf32>
    %c0_8 = arith.constant 0 : index
    %c0_9 = arith.constant 0 : index
    %c0_10 = arith.constant 0 : index
    %12 = vector.load %arg5[%c0_8, %c0_9, %c0_10] : memref<1x8x128xf32, #tpu.memory_space<vmem>>, vector<1x8x128xf32>
    %13 = vector.shape_cast %12 : vector<1x8x128xf32> to vector<8x128xf32>
    %14 = vector.shape_cast %11 : vector<8x128xf32> to vector<1x8x128xf32>
    tpu.vector_store %arg5[%c0_8, %c0_9, %c0_10], %14 {strides = array<i32>} : memref<1x8x128xf32, #tpu.memory_space<vmem>>, vector<1x8x128xf32>,
    return
  }
  func.func @transform_0(%arg0: i32, %arg1: i32) -> (i32, i32, i32) {
    %c0_i32 = arith.constant 0 : i32
    %c0_i32_0 = arith.constant 0 : i32
    return %arg0, %c0_i32, %arg1 : i32, i32, i32
  }
  func.func @transform_1(%arg0: i32, %arg1: i32) -> (i32, i32) {
    %c0_i32 = arith.constant 0 : i32
    %c0_i32_0 = arith.constant 0 : i32
    %c0_i32_1 = arith.constant 0 : i32
    return %c0_i32, %c0_i32_0 : i32, i32
  }
  func.func @transform_2(%arg0: i32, %arg1: i32) -> (i32, i32) {
    %c0_i32 = arith.constant 0 : i32
    %c0_i32_0 = arith.constant 0 : i32
    %c0_i32_1 = arith.constant 0 : i32
    return %c0_i32, %c0_i32_0 : i32, i32
  }
  func.func @transform_3(%arg0: i32, %arg1: i32) -> (i32, i32, i32) {
    %c0_i32 = arith.constant 0 : i32
    %c0_i32_0 = arith.constant 0 : i32
    return %arg0, %c0_i32, %arg1 : i32, i32, i32
  }
}

</mosaic_0001>

<bundles_post_ra>
// kernel: tpu_custom_call.1
= control target key start
LH: loop header
LB: loop body
LE: loop exit
PB: predicated region body
PF: predicated region fallthrough
CT: control target
= control target key end

     0   :  { %8 = vsyncpa [#allocation4], 0  ;;  %s805_s0 = inlined_call_operand.vmem [shape: f32[2,36,256], index: 0, kind: input, shape index: {}]   ;;  %s806_s1 = inlined_call_operand.vmem [shape: f32[8,36], index: 1, kind: input, shape index: {}]   ;;  %s807_s2 = inlined_call_operand.vmem [shape: f32[8,1], index: 2, kind: input, shape index: {}]   ;;  %s808_s3 = inlined_call_operand.hbm [shape: f32[2,8,256], index: 3, kind: output, shape index: {}]  }
   0x1   :  { %10 = vsyncpa [#allocation4 + $0x1], 0  ;;  %s657_s12 = smov 0   ;;  %s659_s13 = smov 0  }
   0x2   :  { %s661_s14 = smov 0   ;;  %s663_s15 = smov 0  }
   0x3   :  { %s665_s16 = smov 0   ;;  %s667_s17 = smov 0  }
   0x4   :  { %s669_s18 = smov 0   ;;  %s671_s19 = smov 0  }
   0x5 LB: > { %s428_s20 = sadd.s32 4294967295, %s631_s19   ;;  %s429_s21 = sadd.s32 4294967294, %s631_s19   ;;  %s631_s19 = sphi %s671_s19, %s16_s19   ;;  %s627_s18 = sphi %s669_s18, %s818_s18   ;;  %s623_s17 = sphi %s667_s17, %s817_s17   ;;  %s619_s16 = sphi %s665_s16, %s816_s16   ;;  %s615_s15 = sphi %s663_s15, %s815_s15   ;;  %s611_s14 = sphi %s661_s14, %s814_s14   ;;  %s607_s13 = sphi %s659_s13, %s813_s13   ;;  %s603_s12 = sphi %s657_s12, %s812_s12  }
   0x6   : > { %s25_s22 = sadd.s32 1, %s623_s17  ;;  %s28_s23 = sadd.s32 1, %s627_s18 }
   0x7   : > { %p26_p0 = scmp.ge.s32.totalorder %s25_s22, 2  ;;  %p44_p1 = scmp.ne.s32.totalorder %s611_s14, %s607_s13 }
   0x8   : > { %p45_p2 = scmp.eq.s32.totalorder %s631_s19, 0  ;;  %p118_p5 = scmp.eq.s32.totalorder %s428_s20, 3 }
   0x9   : > { %s820_s22 = smov (%p26_p0, %s25_s22), 0  ;;  %s822_s23 = smov (!%p26_p0, %s28_s23), %s627_s18 }
   0xa   : > { %s33_s24 = ssub.s32 %s623_s17, %s820_s22  ;;  %p709_p3 = por %p45_p2, %p44_p1 }
   0xb   : > { %p30_p4 = scmp.ge.s32.totalorder %s822_s23, 2  ;;  %p123_p6 = scmp.ne.s32.totalorder %s607_s13, %s603_s12 }
   0xc   : > { %p124_p7 = scmp.eq.s32.totalorder %s429_s21, 3  ;;  %p717_p8 = por %p118_p5, %p44_p1 }
   0xd   : > { %s824_s23 = smov (%p30_p4, %s822_s23), 0  ;;  %s37_s30 = sadd.s32 1, %s611_s14 }
   0xe   : > { %p721_p9 = por %p124_p7, %p123_p6  ;;  %s32_s28 = ssub.s32 %s627_s18, %s824_s23 }
   0xf   : > { %s34_s29 = sor.u32 %s33_s24, %s32_s28  ;;  %p431_p11 = scmp.ge.s32.totalorder %s631_s19, 4 }
  0x10   : > { %p35_p10 = scmp.eq.s32.totalorder %s34_s29, 0 }
  0x11   : > { %146 = sbr.rel (%p431_p11) target bundleno = 32 (0x20), region = 24 }
  0x12   : > { %s729_s4 = scalar_select %p35_p10, %s611_s14, %s37_s30  }
  0x16   : > { %149 = sbr.rel (!%p709_p3) target bundleno = 32 (0x20), region = 28  ;;  %s151_s5 = sand.u32 (%p709_p3), 1, %s611_s14  }
  0x17   : > { %s462_s6 = smul.u32 (%p709_p3), 10, %s627_s18 }
  0x18   : > { %s461_s7 = smul.u32 (%p709_p3), 40, %s151_s5 }
  0x19   : > { %s155_s8 = sadd.s32 (%p709_p3), %s623_s17, %s462_s6 }
  0x1a   : > { %s432_s9 = sshll.u32 (%p709_p3), %s155_s8, 3  ;;  %s153_s21 = scalar_lea.vmem (%p709_p3), [#allocation2], %s461_s7 }
  0x1b   : > { %s157_s20 = scalar_lea.vmem %s805_s0, %s432_s9 }
  0x1c   : > { %v194_v0 = vld [vmem:[%s157_s20] sm:$0xff]  ;;  %v196_v1 = vld [vmem:[%s157_s20 + $0x10] sm:$0xff] }
  0x1d   : > { %v198_v2 = vld [vmem:[%s157_s20 + $0x20] sm:$0xff]  ;;  %195 = vst [vmem:[%s153_s21] sm:$0xff] %v194_v0  ;;  %197 = vst [vmem:[%s153_s21 + $0x8] sm:$0xff] %v196_v1  ;;  %v200_v3 = vld [vmem:[%s157_s20 + $0x30] sm:$0xff] }
  0x1e   : > { %199 = vst [vmem:[%s153_s21 + $0x10] sm:$0xff] %v198_v2  ;;  %v202_v4 = vld [vmem:[%s157_s20 + $0x40] sm:$0xff]  ;;  %201 = vst [vmem:[%s153_s21 + $0x18] sm:$0xff] %v200_v3 }
  0x1f   : > { %203 = vst [vmem:[%s153_s21 + $0x20] sm:$0xff] %v202_v4 }
  0x20 PF: > { %p433_p12 = scmp.ge.s32.totalorder %s631_s19, 1  ;;  %p208_p13 = scmp.lt.s32.totalorder %s631_s19, 5 }
  0x22   : > { %p209_p0 = pnand %p433_p12, %p208_p13 }
  0x23   : > { %s743_s24 = sand.u32 (!%p209_p0), 1, %s607_s13   ;;  %s438_s8 = sshll.u32 (!%p209_p0), %s619_s16, 1 }
  0x24   : > { %212 = sbr.rel (%p209_p0) target bundleno = 263 (0x107), region = 66  ;;  %s434_s7 = sshll.u32 (!%p209_p0), %s743_s24, 3 }
  0x25   : > { %s463_s25 = smul.u32 (!%p209_p0), 40, %s743_s24  ;;  %s344_s9 = sadd.s32 (!%p209_p0), %s615_s15, %s438_s8 }
  0x26   : > { %s439_s10 = sshll.u32 (!%p209_p0), %s344_s9, 7  ;;  %s237_s11 = scalar_lea.vmem (!%p209_p0), [#allocation3], %s434_s7 }
  0x27   : > { %s217_s30 = scalar_lea.vmem (!%p209_p0), [#allocation2], %s463_s25  ;;  %s348_s20 = sshll.u32 (!%p209_p0), %s237_s11, 4  ;;  %s349_s20 = int_to_ptr.vmem [resolvable:$true] %s348_s20 }
  0x28   : > { %s758_s28 = scalar_lea.hbm (!%p209_p0), %s808_s3, %s439_s10  ;;  %s333_s16 = scalar_lea.sflag (!%p209_p0), [#allocation4], %s743_s24 }
  0x29   : > { %v633_v5 = vmov 0.0   ;;  %vm634_vm0 = vmmov 0   ;;  %v244_v6 = vld [vmem:[%s807_s2] sm:$0xff]  ;;  %vm254_vm1 = vcmask 1043456   ;;  %v635_v7 = vmov 0   ;;  %v241_v10 = vld [vmem:[%s217_s30 + $0x10] sm:$0xff] }
  0x2a   : > { %448 = vmatprep.subr.mxu0 %v633_v5  ;;  %458 = vmatprep.mubr.msk.f32.mxu0 %vm634_vm0, %v633_v5  ;;  %v243_v8 = vld [vmem:[%s217_s30 + $0x20] sm:$0xf]  ;;  %v242_v9 = vld [vmem:[%s217_s30 + $0x18] sm:$0xff]  ;;  %v240_v11 = vld [vmem:[%s217_s30 + $0x8] sm:$0xff]  ;;  %vm250_vm2 = vcmask 293888   ;;  %s539_s29 = scalar_lea.vmem %s349_s20, 128 }
  0x2b   : > { %538 = vset.pattern.permute.xlu0 %v635_v7  ;;  %449 = vmatpush3.msk.msra.mxu0 %vm254_vm1, %v243_v8  ;;  %v239_v12 = vld [vmem:[%s217_s30] sm:$0xff]  ;;  %p540_p1 = scmp.ne.s32.totalorder %s349_s20, %s539_s29  ;;  %s636_s15 = smov [#allocation3]  }
  0x2c   : > { %247 = vperm.xlu0 %538, %v244_v6   ;;  %450 = vmatprep.subr.mxu0 %v633_v5  ;;  %v238_v13 = vld [vmem:[%s806_s1] sm:$0xff]  ;;  %s543_s30 = sshll.u32 %s636_s15, 4  ;;  %s544_s30 = int_to_ptr.vmem [resolvable:$false] %s543_s30 }
  0x2d   : > { %451 = vmatpush3.msra.mxu0 %v242_v9  ;;  %p541_p2 = pnand %p540_p1, %p717_p8  ;;  %s545_s5 = scalar_lea.vmem %s544_s30, 256 }
  0x2e   : > { %452 = vmatprep.subr.mxu0 %v633_v5  ;;  %p546_p4 = scmp.lt.s32.totalorder %s349_s20, %s544_s30  ;;  %p547_p5 = scmp.lt.s32.totalorder %s545_s5, %s539_s29 }
  0x2f   : > { %453 = vmatpush3.msra.mxu0 %v241_v10  ;;  %p542_p3 = pneg %p541_p2 }
  0x30   : > { %454 = vmatprep.subr.mxu0 %v633_v5  ;;  %p548_p6 = por %p547_p5, %p546_p4 }
  0x31   : > { %455 = vmatpush3.msra.mxu0 %v240_v11 }
  0x32   : > { %456 = vmatprep.subr.mxu0 %v633_v5  ;;  %p549_p7 = pnand %p548_p6, %p542_p3 }
  0x33   : > { %457 = vmatpush3.msra.mxu0 %v239_v12 }
  0x34   : > { %459 = vmatmul.mubr.msk.f32.vlgmr.msra.gmra.mxu0 %vm250_vm2, %v238_v13 }
  0xa7   : > { %v248_v14 = vpop.permute.xlu0 %247 }
  0xf4   : > { %v324_v15 = vpop.f32.mrf.mxu0 }
  0xf5   : > { %v325_v16 = vadd.f32 %v324_v15, %v248_v14 }
  0xf6   : > { %v460_v17 = vpop.f32.mrf.mxu0 }
  0xf7   : > { %vm328_vm3 = vcmp.gt.f32.partialorder %v325_v16, 0.0  ;;  %v329_v18 = vmul.f32 0.2, %v325_v16 }
  0xf9   : > { %v330_v19 = vsel %vm328_vm3, %v325_v16, %v329_v18 }
  0xfa   : > { %331 = vst [vmem:[%s237_s11] sm:$0xff] %v330_v19 }
  0xfb   : > { %552 = shalt.err (!%p549_p7)
}
  0xfc   : > { %s553_s6 = scalar_lea.hbm %s758_s28, 128  ;;  %s557_s8 = scalar_lea.hbm %s808_s3, 512 }
  0xfd   : > { %p554_p10 = scmp.ne.s32.totalorder %s758_s28, %s553_s6  ;;  %p558_p13 = scmp.lt.s32.totalorder %s758_s28, %s808_s3 }
  0xfe   : > { %p559_p0 = scmp.lt.s32.totalorder %s557_s8, %s553_s6 }
  0xff   : > { %p555_p11 = pnand %p554_p10, %p717_p8 }
 0x100   : > { %p560_p1 = por %p559_p0, %p558_p13 }
 0x101   : > { %p556_p12 = pneg %p555_p11 }
 0x103   : > { %p561_p2 = pnand %p560_p1, %p556_p12 }
 0x105   : > { %564 = shalt.err (!%p561_p2)
}
 0x106   : > { %464 = dma.vmem_to_hbm [thread:$0]  (%p717_p8), %s349_s20, 128, %s758_s28, %s333_s16  }
 0x107 PF: > { %p470_p3 = scmp.ge.s32.totalorder %s631_s19, 2  ;;  %s360_s11 = sand.u32 1, %s603_s12  }
 0x108   : > { %s361_s21 = scalar_lea.sflag [#allocation4], %s360_s11 }
 0x109   : > { %p467_p4 = pnand %p470_p3, %p721_p9 }
 0x10b   : > { %p468_p5 = pneg %p467_p4 }
 0x10d   : > { %598 = dma.done.wait (%p468_p5), %s361_s21, 128  }
 0x10e   : > { %600 = vsyncadd (%p468_p5), %s361_s21, 4294967168  ;;  %s16_s19 = sadd.s32 1, %s631_s19   ;;  %s812_s12 = smov %s607_s13 }
 0x10f   : > { %p13_p6 = scmp.ge.s32.totalorder %s16_s19, 6   ;;  %s813_s13 = smov %s611_s14 }
 0x110   : > { %s814_s14 = smov %s729_s4  ;;  %s815_s15 = smov %s623_s17 }
 0x111   : > { %s816_s16 = smov %s627_s18  ;;  %s817_s17 = smov %s820_s22 }
 0x112   : > { %s818_s18 = smov %s824_s23  ;;  %15 = sbr.rel (!%p13_p6) target bundleno = 5 (0x5), region = 110 }
 0x117   :  { %366 = vsyncpa [#allocation4], 1 }
 0x118   :  { %368 = vsyncpa [#allocation4 + $0x1], 1 }

</bundles_post_ra>
